<compile_context>
chip_gen: v6e
topology: v6e:2x2x1
jax: 0.10.0
libtpu: 0.0.40
codegen_flags: <defaults>
</compile_context>

<pallas_src>
import functools

import jax
import jax.numpy as jnp
from jax.experimental import pallas as pl
from jax.experimental.pallas import tpu as pltpu


_VMEM_LIMIT = 32 * 1024 * 1024  # fits the scoped VMEM budget on v5e / v6e / v7x


def _round_up(x, m):
    return (x + m - 1) // m * m


def _pick_lane_tile(np_):
    # largest lane tile that still gives >= 2 grid steps (v7x has 2 TensorCores)
    for t in (512, 384, 256, 128):
        if np_ % t == 0 and np_ // t >= 2:
            return t
    return np_


def _pick_row_tile(core):
    # sublane tile for the flat-layout convs: fills the MXU M dim while keeping the
    # f32 accumulator pressure modest.
    return min(256, _round_up(core, 8))


# ----------------------------------------------------------------------------
# Kernel 1: fused matmul + bias + optional ReLU (lane-dense [Cout, N] layout).
# Used for the fused 1x1 offset conv and the two deformable-conv matmuls.
# ----------------------------------------------------------------------------
def _matmul_bias_act_kernel(w_ref, c_ref, b_ref, o_ref, *, relu):
    acc = jnp.dot(w_ref[...], c_ref[...], preferred_element_type=jnp.float32)
    acc = acc + b_ref[...]
    if relu:
        acc = jnp.maximum(acc, 0.0)
    o_ref[...] = acc.astype(o_ref.dtype)


def matmul_bias_act(pack, cols, *, relu, out_dtype):
    """pack: {'w': [Mp, K] bf16, 'b': [Mp, 1] f32, 'm': M}; cols: [K, N] -> [M, N]."""
    w, b, m = pack["w"], pack["b"], pack["m"]
    mp, k = w.shape
    kc, n = cols.shape
    assert k == kc
    cols = cols.astype(jnp.bfloat16)
    np_ = _round_up(n, 128)
    if np_ != n:  # rare ragged case; demo shapes are already lane aligned
        cols = jnp.pad(cols, ((0, 0), (0, np_ - n)))
    tn = _pick_lane_tile(np_)
    out = pl.pallas_call(
        functools.partial(_matmul_bias_act_kernel, relu=relu),
        out_shape=jax.ShapeDtypeStruct((mp, np_), out_dtype),
        grid=(np_ // tn,),
        in_specs=[
            pl.BlockSpec((mp, k), lambda j: (0, 0)),   # weights resident
            pl.BlockSpec((k, tn), lambda j: (0, j)),   # columns tiled over lanes
            pl.BlockSpec((mp, 1), lambda j: (0, 0)),   # bias resident
        ],
        out_specs=pl.BlockSpec((mp, tn), lambda j: (0, j)),
        compiler_params=pltpu.CompilerParams(
            dimension_semantics=("parallel",),
            vmem_limit_bytes=_VMEM_LIMIT),
    )(w, cols, b)
    return out[:m, :n]


# ----------------------------------------------------------------------------
# Kernel 2: fused k x k conv (+bias, optional ReLU) on the flat padded layout.
# In-kernel im2col: each tap is a constant row shift of the resident input.
# ----------------------------------------------------------------------------
def _conv_flat_kernel(w_ref, b_ref, m_ref, x_ref, o_ref, *,
                      tap_offsets, tm, g_front, g_back, relu):
    j = pl.program_id(0)
    nb = pl.num_programs(0)
    in_core = jnp.logical_and(j >= g_front, j < nb - g_back)

    @pl.when(jnp.logical_not(in_core))
    def _():
        # guard blocks: keep them zero so they act as the halo for downstream convs
        o_ref[...] = jnp.zeros_like(o_ref)

    @pl.when(in_core)
    def _():
        row0 = j * tm
        acc = jnp.zeros(o_ref.shape, jnp.float32)
        for t, off in enumerate(tap_offsets):
            xs = x_ref[pl.ds(row0 + off, tm), :]          # dynamic sublane-shifted tap
            acc = acc + jnp.dot(xs, w_ref[t],
                                preferred_element_type=jnp.float32)
        acc = acc + b_ref[...]
        if relu:
            acc = jnp.maximum(acc, 0.0)
        # mask zeroes padded / guard / round-up positions so the output can feed the
        # next conv directly (its zero padding is already in place)
        o_ref[...] = (acc * m_ref[...]).astype(o_ref.dtype)


def conv_flat(pack, x_flat, geom):
    k, cin, coutp = pack["k"], pack["cin"], pack["coutp"]
    kk = k * k
    nt, tm, g = geom.NT, geom.tm, geom.g
    assert x_flat.shape == (nt, cin)
    kernel = functools.partial(
        _conv_flat_kernel, tap_offsets=geom.tap_offsets(k), tm=tm,
        g_front=g, g_back=g, relu=pack["relu"])
    return pl.pallas_call(
        kernel,
        out_shape=jax.ShapeDtypeStruct((nt, coutp), jnp.bfloat16),
        grid=(nt // tm,),
        in_specs=[
            pl.BlockSpec((kk, cin, coutp), lambda j: (0, 0, 0)),  # taps resident (bf16)
            pl.BlockSpec((1, coutp), lambda j: (0, 0)),           # bias resident (f32)
            pl.BlockSpec((tm, 1), lambda j: (j, 0)),              # validity mask tile
            pl.BlockSpec((nt, cin), lambda j: (0, 0)),            # full activation resident
        ],
        out_specs=pl.BlockSpec((tm, coutp), lambda j: (j, 0)),
        compiler_params=pltpu.CompilerParams(
            dimension_semantics=("parallel",),
            vmem_limit_bytes=_VMEM_LIMIT),
    )(pack["w"], pack["b"], geom.mask, x_flat.astype(jnp.bfloat16))
    # TODO(synk): at real BEV sizes the resident input should become a halo'd manual
    #             DMA pipeline; per-branch chain fusion with VMEM intermediates is also
    #             left for a follow-up.


# ----------------------------------------------------------------------------
# Flat padded activation layout.
# ----------------------------------------------------------------------------
class _Geometry:
    """Row g*tm + b*Hp*Wp + y*Wp + x holds the zero-padded (pad=1) image value at
    padded coords (y, x); rows outside that range are zero guard blocks.  A conv
    output for pixel (r, c) is stored at padded coords (r+1, c+1), so every tap of a
    k x k (k<=3) conv is a constant row shift of (di - k//2)*Wp + (dj - k//2)."""

    def __init__(self, B, H, W):
        self.B, self.H, self.W = B, H, W
        self.Hp, self.Wp = H + 2, W + 2
        self.core = B * self.Hp * self.Wp
        self.tm = _pick_row_tile(self.core)
        halo = self.Wp + 1
        self.g = -(-halo // self.tm)
        n_core_blocks = -(-self.core // self.tm)
        self.NT = (2 * self.g + n_core_blocks) * self.tm
        self.row0 = self.g * self.tm
        f = jnp.arange(self.NT, dtype=jnp.int32)
        r = f - self.row0
        in_core = (r >= 0) & (r < self.core)
        rr = jnp.where(in_core, r, 0)
        y = (rr % (self.Hp * self.Wp)) // self.Wp
        x = rr % self.Wp
        valid = in_core & (y >= 1) & (y <= H) & (x >= 1) & (x <= W)
        self.mask = valid.astype(jnp.float32)[:, None]   # [NT, 1]

    def tap_offsets(self, k):
        pad = k // 2
        return tuple((di - pad) * self.Wp + (dj - pad)
                     for di in range(k) for dj in range(k))


def _bhwc_to_flat(x_bhwc, geom, dtype=jnp.bfloat16):
    b, h, w, c = x_bhwc.shape
    xp = jnp.pad(x_bhwc, ((0, 0), (1, 1), (1, 1), (0, 0)))
    xf = xp.reshape(b * geom.Hp * geom.Wp, c)
    out = jnp.pad(xf, ((geom.row0, geom.NT - geom.row0 - geom.core), (0, 0)))
    return out.astype(dtype)


def _flat_to_bchw(flat, geom, c0, c1):
    core = flat[geom.row0:geom.row0 + geom.core, c0:c1]
    core = core.reshape(geom.B, geom.Hp, geom.Wp, c1 - c0)
    img = core[:, 1:geom.H + 1, 1:geom.W + 1, :]
    return jnp.transpose(img, (0, 3, 1, 2)).astype(jnp.float32)


# ----------------------------------------------------------------------------
# Deformable conv bilinear sampling (single combined 4-corner gather, bf16 values).
# TODO(synk): the data-dependent bilinear gather has no clean BlockSpec equivalent;
#             it stays as JAX glue feeding the Pallas matmul.
# ----------------------------------------------------------------------------
def _bilinear_cols(x_cb, off_rows, dg, H, W):
    """x_cb: [C, B, H, W] f32, off_rows: [dg*2*9, B*H*W] f32 -> cols [C*9, B*H*W] bf16."""
    C, B = x_cb.shape[0], x_cb.shape[1]
    Cg, KK = C // dg, 9
    off = off_rows.reshape(dg, KK, 2, B, H, W)
    dy, dx = off[:, :, 0], off[:, :, 1]                       # [dg, KK, B, H, W]
    t = jnp.arange(KK)
    ih = (t // 3).astype(jnp.float32) - 1.0
    iw = (t % 3).astype(jnp.float32) - 1.0
    base_y = ih[None, :, None, None, None] + \
        jnp.arange(H, dtype=jnp.float32)[None, None, None, :, None]
    base_x = iw[None, :, None, None, None] + \
        jnp.arange(W, dtype=jnp.float32)[None, None, None, None, :]
    py, px = dy + base_y, dx + base_x
    y0, x0 = jnp.floor(py), jnp.floor(px)
    y1, x1 = y0 + 1.0, x0 + 1.0
    wy1, wx1 = py - y0, px - x0
    wy0, wx0 = 1.0 - wy1, 1.0 - wx1

    b_idx = jnp.arange(B, dtype=jnp.int32)[None, None, :, None, None]

    def corner(yi, xi, wgt):
        valid = (yi >= 0) & (yi <= H - 1) & (xi >= 0) & (xi <= W - 1)
        yc = jnp.clip(yi, 0, H - 1).astype(jnp.int32)
        xc = jnp.clip(xi, 0, W - 1).astype(jnp.int32)
        return b_idx * (H * W) + yc * W + xc, wgt * valid.astype(jnp.float32)

    idxs, wgts = [], []
    for yi, xi, wgt in ((y0, x0, wy0 * wx0), (y0, x1, wy0 * wx1),
                        (y1, x0, wy1 * wx0), (y1, x1, wy1 * wx1)):
        i_, w_ = corner(yi, xi, wgt)
        idxs.append(i_)
        wgts.append(w_)
    idx = jnp.stack(idxs, axis=1)                             # [dg, 4, KK, B, H, W]
    wgt = jnp.stack(wgts, axis=1)

    x_g = x_cb.reshape(dg, Cg, B * H * W).astype(jnp.bfloat16)
    idx_flat = jnp.broadcast_to(idx.reshape(dg, 1, 4 * KK * B * H * W),
                                (dg, Cg, 4 * KK * B * H * W))
    v = jnp.take_along_axis(x_g, idx_flat, axis=-1)
    v = v.reshape(dg, Cg, 4, KK, B * H * W).astype(jnp.float32)
    wgt = wgt.reshape(dg, 1, 4, KK, B * H * W)
    vals = jnp.sum(v * wgt, axis=2)                           # [dg, Cg, KK, B*H*W]
    return vals.reshape(C * KK, B * H * W).astype(jnp.bfloat16)


# ----------------------------------------------------------------------------
# Parameter init (deterministic, synthetic) + kernel-ready packing.
# ----------------------------------------------------------------------------
def _bn_fold(w, b, cout, eps=1e-5):
    gamma = jnp.ones((cout,), jnp.float32)
    beta = jnp.zeros((cout,), jnp.float32)
    mean = jnp.zeros((cout,), jnp.float32)
    var = jnp.ones((cout,), jnp.float32)
    scale = gamma / jnp.sqrt(var + eps)
    return w * scale[:, None, None, None], (b - mean) * scale + beta


def _pack_matmul(w2d, b1d):
    m, k = w2d.shape
    mp = _round_up(max(m, 8), 8)
    w = jnp.zeros((mp, k), jnp.float32).at[:m].set(w2d).astype(jnp.bfloat16)
    b = jnp.zeros((mp, 1), jnp.float32).at[:m, 0].set(b1d)
    return {"w": w, "b": b, "m": m}


def _pack_flat_conv(blocks, cin_total, k, relu):
    """blocks: list of (w [co, ci, k, k], b [co], input-channel offset) -> one fused conv."""
    cout_total = sum(int(w.shape[0]) for (w, _, _) in blocks)
    coutp = _round_up(max(cout_total, 8), 8)
    taps = jnp.zeros((k * k, cin_total, coutp), jnp.float32)
    bias = jnp.zeros((1, coutp), jnp.float32)
    r = 0
    for (w, b, c0) in blocks:
        co, ci = int(w.shape[0]), int(w.shape[1])
        for di in range(k):
            for dj in range(k):
                taps = taps.at[di * k + dj, c0:c0 + ci, r:r + co].set(
                    jnp.transpose(w[:, :, di, dj]))
        bias = bias.at[0, r:r + co].set(b)
        r += co
    return {"w": taps.astype(jnp.bfloat16), "b": bias, "k": k, "relu": relu,
            "cin": cin_total, "cout": cout_total, "coutp": coutp}


def init_dcn_bundle_head(key, in_channels, num_cls, heads, head_conv=64,
                         final_kernel=1, init_bias=-2.19, dg=4):
    keys = iter(jax.random.split(key, 128))
    C, hc = in_channels, head_conv

    def conv_p(cout, cin, k, std=0.05, bias_fill=None):
        kw, kb = jax.random.split(next(keys))
        w = jax.random.normal(kw, (cout, cin, k, k), jnp.float32) * std
        if bias_fill is None:
            b = jax.random.normal(kb, (cout,), jnp.float32) * std
        else:
            b = jnp.full((cout,), bias_fill, jnp.float32)
        return w, b

    p = {"meta": {"num_cls": num_cls, "head_conv": hc, "dg": dg,
                  "final_kernel": final_kernel}}

    # FeatureAdaption x2: fused 1x1 offset conv (both branches) + per-branch 3x3 DCN weight.
    off_w, off_b, dcn = [], [], {}
    for name in ("cls", "reg"):
        ow, ob = conv_p(dg * 2 * 9, C, 1, std=0.01)
        off_w.append(ow.reshape(dg * 2 * 9, C))
        off_b.append(ob)
        dw, _ = conv_p(C, C, 3)
        dcn[name] = _pack_matmul(dw.reshape(C, C * 9), jnp.zeros((C,), jnp.float32))
    p["offset"] = _pack_matmul(jnp.concatenate(off_w, 0), jnp.concatenate(off_b, 0))
    p["dcn"] = dcn

    # Stage 1 (shared-input fusion on map_feat): center_conv | corner_conv | fg_conv[0] (+BN+ReLU).
    cc_w, cc_b = _bn_fold(*conv_p(hc, C, 3), hc)
    co_w, co_b = _bn_fold(*conv_p(hc, C, 3), hc)
    f1_w, f1_b = _bn_fold(*conv_p(hc, C, 3), hc)
    p["stage1"] = _pack_flat_conv([(cc_w, cc_b, 0), (co_w, co_b, 0), (f1_w, f1_b, 0)],
                                  cin_total=C, k=3, relu=True)

    # Stage 2 (block-diagonal fusion over stage-1 channels): center_head | corner_head | fg_conv[1].
    ch_w, ch_b = conv_p(num_cls, hc, 3, bias_fill=init_bias)
    cr_w, cr_b = conv_p(num_cls * 4, hc, 3, bias_fill=init_bias)
    f2_w, f2_b = conv_p(num_cls, hc, 3)
    p["stage2"] = _pack_flat_conv([(ch_w, ch_b, 0), (cr_w, cr_b, hc), (f2_w, f2_b, 2 * hc)],
                                  cin_total=p["stage1"]["coutp"], k=3, relu=False)

    # fg_head reads fg_feat (= stage-2 channels [5*num_cls, 6*num_cls)); like the reference
    # module this only type-checks when num_cls == head_conv.
    assert num_cls == head_conv, "DCNBundleHead.fg_head requires num_cls == head_conv"
    fh_w, fh_b = conv_p(num_cls, hc, 3, bias_fill=init_bias)
    p["fg_head"] = _pack_flat_conv([(fh_w, fh_b, 5 * num_cls)],
                                   cin_total=p["stage2"]["coutp"], k=3, relu=False)

    # Task head (NaiveSepHead, bn=False).
    fk = final_kernel
    if all(ncv == 2 for (_, ncv) in heads.values()):
        mids, finals = [], []
        for i, (name, (classes, _)) in enumerate(heads.items()):
            mw, mb = conv_p(hc, C, fk)
            fw, fb = conv_p(classes, hc, fk)
            mids.append((mw, mb, 0))
            finals.append((fw, fb, i * hc))
        p["task_mid"] = _pack_flat_conv(mids, cin_total=C, k=fk, relu=True)
        p["task_final"] = _pack_flat_conv(finals, cin_total=p["task_mid"]["coutp"],
                                          k=fk, relu=False)
    else:
        # TODO(synk): heterogeneous num_conv -> per-head (unfused) flat convs.
        th = {}
        for name, (classes, ncv) in heads.items():
            packs, cin_ch, cin_tot = [], C, C
            for _ in range(ncv - 1):
                w, b = conv_p(hc, cin_ch, fk)
                packs.append(_pack_flat_conv([(w, b, 0)], cin_total=cin_tot, k=fk, relu=True))
                cin_ch, cin_tot = hc, packs[-1]["coutp"]
            w, b = conv_p(classes, cin_ch, fk)
            packs.append(_pack_flat_conv([(w, b, 0)], cin_total=cin_tot, k=fk, relu=False))
            th[name] = packs
        p["task_heads"] = th
    return p


# ----------------------------------------------------------------------------
# Forward
# ----------------------------------------------------------------------------
def dcn_bundle_head_forward(params, x, heads, *, dg=4):
    B, C, H, W = x.shape
    geom = _Geometry(B, H, W)
    num_cls = params["meta"]["num_cls"]

    x_cb = jnp.transpose(x, (1, 0, 2, 3))                       # [C, B, H, W]
    xc = x_cb.reshape(C, B * H * W).astype(jnp.bfloat16)

    # FeatureAdaption x2: fused 1x1 offset conv + bilinear sampling + DCN matmul + ReLU.
    off_all = matmul_bias_act(params["offset"], xc, relu=False, out_dtype=jnp.float32)
    n_off = dg * 2 * 9
    feat_flat = {}
    for i, name in enumerate(("cls", "reg")):
        cols = _bilinear_cols(x_cb, off_all[i * n_off:(i + 1) * n_off], dg, H, W)
        feat = matmul_bias_act(params["dcn"][name], cols, relu=True,
                               out_dtype=jnp.bfloat16)           # [C, B*H*W]
        feat_bhwc = jnp.transpose(feat.reshape(C, B, H, W), (1, 2, 3, 0))
        feat_flat[name] = _bhwc_to_flat(feat_bhwc, geom)
    map_flat, reg_flat = feat_flat["cls"], feat_flat["reg"]

    ret = {}

    # Task head (NaiveSepHead) on reg_feat.
    if "task_mid" in params:
        mid = conv_flat(params["task_mid"], reg_flat, geom)
        fin = conv_flat(params["task_final"], mid, geom)
        r0 = 0
        for name, (classes, _) in heads.items():
            ret[name] = _flat_to_bchw(fin, geom, r0, r0 + classes)
            r0 += classes
    else:
        for name, packs in params["task_heads"].items():
            h = reg_flat
            for pk in packs[:-1]:
                h = conv_flat(pk, h, geom)
            out = conv_flat(packs[-1], h, geom)
            ret[name] = _flat_to_bchw(out, geom, 0, heads[name][0])

    # center / corner / foreground branches on map_feat: two fused 3x3 stages + fg_head.
    s1 = conv_flat(params["stage1"], map_flat, geom)             # [NT, 3*head_conv]
    s2 = conv_flat(params["stage2"], s1, geom)                   # [NT, 6*num_cls]
    ret["center_map"] = _flat_to_bchw(s2, geom, 0, num_cls)
    ret["corner_map"] = _flat_to_bchw(s2, geom, num_cls, 5 * num_cls)
    fg = conv_flat(params["fg_head"], s2, geom)                  # [NT, num_cls]
    ret["foreground_map"] = _flat_to_bchw(fg, geom, 0, num_cls)
    return ret


# ----------------------------------------------------------------------------
if __name__ == "__main__":
    key = jax.random.PRNGKey(0)
    pk, xk = jax.random.split(key)

    # NOTE: the reference forward requires num_cls == head_conv (fg_conv outputs num_cls
    # channels which feed fg_head expecting head_conv channels).
    B, in_channels, H, W = 2, 16, 16, 16
    num_cls = 8
    head_conv = 8
    heads = {"reg": (2, 2), "height": (1, 2), "dim": (3, 2), "rot": (2, 2)}

    params = init_dcn_bundle_head(pk, in_channels, num_cls, heads,
                                  head_conv=head_conv, final_kernel=1)
    x = jax.random.normal(xk, (B, in_channels, H, W), jnp.float32)

    out = dcn_bundle_head_forward(params, x, heads, dg=4)
    out = jax.block_until_ready(out)

    # shape / sanity checks
    assert out["center_map"].shape == (B, num_cls, H, W)
    assert out["corner_map"].shape == (B, num_cls * 4, H, W)
    assert out["foreground_map"].shape == (B, num_cls, H, W)
    for name, (classes, _) in heads.items():
        assert out[name].shape == (B, classes, H, W)
    for v in out.values():
        assert bool(jnp.all(jnp.isfinite(v)))

    print("KERNEL_OK")
</pallas_src>

<mosaic_0001>
module attributes {stable_mosaic.version = 11 : i64} {
  func.func @_matmul_bias_act_kernel(%arg0: i32, %arg1: memref<144x16xbf16, #tpu.memory_space<vmem>>, %arg2: memref<16x256xbf16, #tpu.memory_space<vmem>>, %arg3: memref<144x1xf32, #tpu.memory_space<vmem>>, %arg4: memref<144x256xf32, #tpu.memory_space<vmem>>) attributes {dimension_semantics = [#tpu.dimension_semantics<parallel>], iteration_bounds = array<i64: 2>, scalar_prefetch = 0 : i64, scratch_operands = 0 : i64, tpu.core_type = #tpu.core_type<tc>, window_params = [{pipeline_mode = #tpu.pipeline_mode<synchronous>, transform_indices = @transform_0, window_bounds = array<i64: 144, 16>}, {transform_indices = @transform_1, window_bounds = array<i64: 16, 256>}, {pipeline_mode = #tpu.pipeline_mode<synchronous>, transform_indices = @transform_2, window_bounds = array<i64: 144, 1>}, {transform_indices = @transform_3, window_bounds = array<i64: 144, 256>}]} {
    %c0 = arith.constant 0 : index
    %c0_0 = arith.constant 0 : index
    %0 = vector.load %arg1[%c0, %c0_0] : memref<144x16xbf16, #tpu.memory_space<vmem>>, vector<144x16xbf16>
    %c0_1 = arith.constant 0 : index
    %c0_2 = arith.constant 0 : index
    %1 = vector.load %arg2[%c0_1, %c0_2] : memref<16x256xbf16, #tpu.memory_space<vmem>>, vector<16x256xbf16>
    %cst = arith.constant dense<0.000000e+00> : vector<144x256xf32>
    %2 = tpu.matmul %0, %1, %cst {dimension_numbers = #tpu.dot_dimension_numbers<[1], [0], [0], [1], [0, 0, 1, 1], [], []>} : vector<144x16xbf16>, vector<16x256xbf16>, vector<144x256xf32> -> vector<144x256xf32>
    %c0_3 = arith.constant 0 : index
    %c0_4 = arith.constant 0 : index
    %3 = vector.load %arg3[%c0_3, %c0_4] : memref<144x1xf32, #tpu.memory_space<vmem>>, vector<144x1xf32>
    %4 = vector.broadcast %3 : vector<144x1xf32> to vector<144x256xf32>
    %5 = arith.addf %2, %4 : vector<144x256xf32>
    %c0_5 = arith.constant 0 : index
    %c0_6 = arith.constant 0 : index
    %6 = vector.load %arg4[%c0_5, %c0_6] : memref<144x256xf32, #tpu.memory_space<vmem>>, vector<144x256xf32>
    tpu.vector_store %arg4[%c0_5, %c0_6], %5 {strides = array<i32>} : memref<144x256xf32, #tpu.memory_space<vmem>>, vector<144x256xf32>,
    return
  }
  func.func @transform_0(%arg0: i32) -> (i32, i32) {
    %c0_i32 = arith.constant 0 : i32
    %c0_i32_0 = arith.constant 0 : i32
    %c0_i32_1 = arith.constant 0 : i32
    return %c0_i32, %c0_i32_0 : i32, i32
  }
  func.func @transform_1(%arg0: i32) -> (i32, i32) {
    %c0_i32 = arith.constant 0 : i32
    %c0_i32_0 = arith.constant 0 : i32
    return %c0_i32, %arg0 : i32, i32
  }
  func.func @transform_2(%arg0: i32) -> (i32, i32) {
    %c0_i32 = arith.constant 0 : i32
    %c0_i32_0 = arith.constant 0 : i32
    %c0_i32_1 = arith.constant 0 : i32
    return %c0_i32, %c0_i32_0 : i32, i32
  }
  func.func @transform_3(%arg0: i32) -> (i32, i32) {
    %c0_i32 = arith.constant 0 : i32
    %c0_i32_0 = arith.constant 0 : i32
    return %c0_i32, %arg0 : i32, i32
  }
}

</mosaic_0001>

<bundles_post_ra>
// kernel: tpu_custom_call.1
= control target key start
LH: loop header
LB: loop body
LE: loop exit
PB: predicated region body
PF: predicated region fallthrough
CT: control target
= control target key end

     0   :  { %8 = vsyncpa [#allocation4], 0  ;;  %s1109_s0 = inlined_call_operand.vmem [shape: bf16[144,16], index: 0, kind: input, shape index: {}]   ;;  %s1110_s1 = inlined_call_operand.vmem [shape: bf16[16,512], index: 1, kind: input, shape index: {}]   ;;  %s1111_s2 = inlined_call_operand.vmem [shape: f32[144,1], index: 2, kind: input, shape index: {}]   ;;  %s1112_s3 = inlined_call_operand.hbm [shape: f32[144,512], index: 3, kind: output, shape index: {}]  }
   0x1   :  { %10 = vsyncpa [#allocation4 + $0x1], 0  ;;  %s845_s12 = smov 0   ;;  %s847_s13 = smov 0  }
   0x2   :  { %s849_s14 = smov 0   ;;  %s851_s15 = smov 0  }
   0x3 LB: > { %s663_s16 = sadd.s32 4294967295, %s818_s15   ;;  %s664_s17 = sadd.s32 4294967294, %s818_s15   ;;  %s818_s15 = sphi %s851_s15, %s1118_s15   ;;  %s814_s14 = sphi %s849_s14, %s1117_s14   ;;  %s810_s13 = sphi %s847_s13, %s1116_s13   ;;  %s806_s12 = sphi %s845_s12, %s1115_s12  }
   0x4   : > { %s868_s18 = sadd.s32 1, %s818_s15   ;;  %s44_s19 = sadd.s32 1, %s814_s14 }
   0x5   : > { %s41_s20 = ssub.s32 %s818_s15, %s868_s18  ;;  %p51_p0 = scmp.ne.s32.totalorder %s814_s14, %s810_s13 }
   0x6   : > { %p42_p1 = scmp.eq.s32.totalorder %s41_s20, 0  ;;  %p52_p2 = scmp.eq.s32.totalorder %s818_s15, 0 }
   0x7   : > { %p102_p3 = scmp.eq.s32.totalorder %s663_s16, 1  ;;  %p107_p4 = scmp.ne.s32.totalorder %s810_s13, %s806_s12 }
   0x8   : > { %s881_s21 = scalar_select %p42_p1, %s814_s14, %s44_s19  }
   0x9   : > { %p53_p5 = por %p52_p2, %p51_p0  ;;  %p883_p6 = por %p102_p3, %p51_p0 }
   0xa   : > { %p108_p7 = scmp.eq.s32.totalorder %s664_s17, 1  ;;  %p666_p9 = scmp.ge.s32.totalorder %s818_s15, 2 }
   0xc   : > { %p887_p8 = por %p108_p7, %p107_p4  ;;  %130 = sbr.rel (%p666_p9) target bundleno = 22 (0x16), region = 24 }
  0x11   : > { %133 = sbr.rel (!%p53_p5) target bundleno = 22 (0x16), region = 28  ;;  %s135_s24 = sand.u32 (%p53_p5), 1, %s814_s14  }
  0x12   : > { %s696_s25 = sshll.u32 (%p53_p5), %s818_s15, 3  ;;  %s667_s26 = sshll.u32 (%p53_p5), %s135_s24, 4 }
  0x13   : > { %s140_s29 = scalar_lea.vmem (%p53_p5), %s1110_s1, %s696_s25  ;;  %s137_s30 = scalar_lea.vmem (%p53_p5), [#allocation2], %s667_s26 }
  0x14   : > { %v171_v0 = vld [vmem:[%s140_s29] sm:$0xff] (%p53_p5)  ;;  %v173_v1 = vld [vmem:[%s140_s29 + $0x10] sm:$0xff] (%p53_p5) }
  0x15   : > { %172 = vst [vmem:[%s137_s30] sm:$0xff] (%p53_p5), %v171_v0  ;;  %174 = vst [vmem:[%s137_s30 + $0x8] sm:$0xff] (%p53_p5), %v173_v1 }
  0x16 PF: > { %p670_p10 = scmp.ge.s32.totalorder %s818_s15, 1  ;;  %p179_p11 = scmp.lt.s32.totalorder %s818_s15, 3 }
  0x18   : > { %p180_p12 = pnand %p670_p10, %p179_p11 }
  0x19   : > { %s902_s4 = sand.u32 (!%p180_p12), 1, %s810_s13   ;;  %s697_s17 = sshll.u32 (!%p180_p12), %s663_s16, 8 }
  0x1a   : > { %183 = sbr.rel (%p180_p12) target bundleno = 286 (0x11e), region = 66  ;;  %s671_s5 = sshll.u32 (!%p180_p12), %s902_s4, 4 }
  0x1b   : > { %s188_s6 = scalar_lea.vmem (!%p180_p12), [#allocation2], %s671_s5  ;;  %s700_s10 = smul.u32 (!%p180_p12), 288, %s902_s4 }
  0x1c   : > { %s1061_s25 = scalar_lea.hbm (!%p180_p12), %s1112_s3, %s697_s17  ;;  %s583_s16 = scalar_lea.sflag (!%p180_p12), [#allocation4], %s902_s4 }
  0x1d   : > { %s1008_s11 = scalar_lea.vmem (!%p180_p12), [#allocation3], %s700_s10  ;;  %s821_s27 = smov (!%p180_p12), [#allocation3]  }
  0x1e   : > { %s596_s19 = sshll.u32 (!%p180_p12), %s1008_s11, 4  ;;  %s762_s28 = sshll.u32 (!%p180_p12), %s821_s27, 4  ;;  %s1063_s19 = int_to_ptr.vmem [resolvable:$true] %s596_s19  ;;  %s763_s28 = int_to_ptr.vmem [resolvable:$false] %s762_s28 }
  0x1f   : > { %v820_v2 = vmov 0   ;;  %v746_v3 = vld [vmem:[%s188_s6 + $0x4] ss:$8 sps:$4 sm:$0xff]   ;;  %v748_v5 = vld [vmem:[%s188_s6] ss:$8 sps:$4 sm:$0xff]   ;;  %vm395_vm0 = vcmask 130048   ;;  %p765_p2 = scmp.lt.s32.totalorder %s1063_s19, %s763_s28 }
  0x20   : > { %455 = vmatprep.mubr.bf16.mxu0 %v820_v2  ;;  %505 = vmatprep.mubr.bf16.mxu1 %v820_v2  ;;  %v749_v4 = vld [vmem:[%s1109_s0] sm:$0xff]   ;;  %v750_v6 = vld [vmem:[%s1109_s0 + $0x28] sm:$0xff]   ;;  %v234_v7 = vld [vmem:[%s1111_s2 + $0x10] sm:$0xff]  ;;  %s758_s26 = scalar_lea.vmem %s1063_s19, 4608  ;;  %s764_s29 = scalar_lea.vmem %s763_s28, 9216 }
  0x21   : > { %745 = vset.pattern.permute.xlu1 %v820_v2  ;;  %744 = vset.pattern.permute.xlu0 %v820_v2  ;;  %v232_v8 = vld [vmem:[%s1111_s2] sm:$0xff]  ;;  %v751_v9 = vld [vmem:[%s1109_s0 + $0x8] sm:$0xff]   ;;  %v752_v10 = vld [vmem:[%s1109_s0 + $0x30] sm:$0xff]   ;;  %p759_p13 = scmp.ne.s32.totalorder %s1063_s19, %s758_s26  ;;  %p766_p3 = scmp.lt.s32.totalorder %s764_s29, %s758_s26 }
  0x22   : > { %437 = vmatprep.subr.bf16.mxu0 %v746_v3  ;;  %698 = vmatprep.subr.bf16.mxu1 %v746_v3  ;;  %v235_v11 = vld [vmem:[%s1111_s2 + $0x18] sm:$0xff]  ;;  %v233_v12 = vld [vmem:[%s1111_s2 + $0x8] sm:$0xff]  ;;  %v236_v14 = vld [vmem:[%s1111_s2 + $0x20] sm:$0xff] }
  0x23   : > { %438 = vmatpush1.bf16.msra.mxu0 %v748_v5  ;;  %699 = vmatpush1.bf16.msra.mxu1 %v748_v5  ;;  %v237_v13 = vld [vmem:[%s1111_s2 + $0x28] sm:$0xff]  ;;  %v753_v15 = vld [vmem:[%s1109_s0 + $0x10] sm:$0xff]   ;;  %v754_v16 = vld [vmem:[%s1109_s0 + $0x38] sm:$0xff]   ;;  %p760_p0 = pnand %p759_p13, %p883_p6  ;;  %p767_p4 = por %p766_p3, %p765_p2 }
  0x24   : > { %262 = vperm.xlu1 %745, %v234_v7   ;;  %252 = vperm.xlu0 %744, %v232_v8   ;;  %v239_v17 = vld [vmem:[%s1111_s2 + $0x38] sm:$0xff]  ;;  %v238_v18 = vld [vmem:[%s1111_s2 + $0x30] sm:$0xff]  ;;  %v241_v19 = vld [vmem:[%s1111_s2 + $0x48] sm:$0xff] }
  0x25   : > { %v240_v20 = vld [vmem:[%s1111_s2 + $0x40] sm:$0xff]  ;;  %v755_v21 = vld [vmem:[%s1109_s0 + $0x18] sm:$0xff]   ;;  %v242_v24 = vld [vmem:[%s1111_s2 + $0x50] sm:$0xff]  ;;  %p761_p1 = pneg %p760_p0 }
  0x26   : > { %683 = vmatmul.mubr.msk.bf16.vlgmr.msra.gmra.mxu0 %vm395_vm0, %v749_v4  ;;  %688 = vmatmul.mubr.msk.bf16.vlgmr.msra.gmra.mxu1 %vm395_vm0, %v750_v6  ;;  %v756_v22 = vld [vmem:[%s1109_s0 + $0x40] sm:$0xff]   ;;  %v243_v23 = vld [vmem:[%s1111_s2 + $0x58] sm:$0xff]  ;;  %v245_v25 = vld [vmem:[%s1111_s2 + $0x68] sm:$0xff] }
  0x27   : > { %465 = vmatprep.mubr.bf16.mxu0 %v820_v2  ;;  %515 = vmatprep.mubr.bf16.mxu1 %v820_v2  ;;  %v244_v26 = vld [vmem:[%s1111_s2 + $0x60] sm:$0xff]  ;;  %v247_v28 = vld [vmem:[%s1111_s2 + $0x78] sm:$0xff]  ;;  %v246_v29 = vld [vmem:[%s1111_s2 + $0x70] sm:$0xff]  ;;  %p768_p5 = pnand %p767_p4, %p761_p1 }
  0x28   : > { %267 = vperm.xlu1 %745, %v235_v11   ;;  %257 = vperm.xlu0 %744, %v233_v12   ;;  %v757_v27 = vld [vmem:[%s1109_s0 + $0x20] sm:$0xff]   ;;  %v249_v30 = vld [vmem:[%s1111_s2 + $0x88] sm:$0xff] }
  0x29   : > { %v248_v31 = vld [vmem:[%s1111_s2 + $0x80] sm:$0xff] }
  0x2c   : > { %277 = vperm.xlu1 %745, %v237_v13   ;;  %272 = vperm.xlu0 %744, %v236_v14  }
  0x2e   : > { %684 = vmatmul.mubr.msk.bf16.gmra.mxu0 %vm395_vm0, %v751_v9  ;;  %689 = vmatmul.mubr.msk.bf16.gmra.mxu1 %vm395_vm0, %v752_v10 }
  0x2f   : > { %475 = vmatprep.mubr.bf16.mxu0 %v820_v2  ;;  %525 = vmatprep.mubr.bf16.mxu1 %v820_v2 }
  0x30   : > { %287 = vperm.xlu1 %745, %v239_v17   ;;  %282 = vperm.xlu0 %744, %v238_v18  }
  0x34   : > { %297 = vperm.xlu1 %745, %v241_v19   ;;  %292 = vperm.xlu0 %744, %v240_v20  }
  0x36   : > { %685 = vmatmul.mubr.msk.bf16.gmra.mxu0 %vm395_vm0, %v753_v15  ;;  %690 = vmatmul.mubr.msk.bf16.gmra.mxu1 %vm395_vm0, %v754_v16 }
  0x37   : > { %485 = vmatprep.mubr.bf16.mxu0 %v820_v2  ;;  %535 = vmatprep.mubr.bf16.mxu1 %v820_v2 }
  0x38   : > { %307 = vperm.xlu1 %745, %v243_v23   ;;  %302 = vperm.xlu0 %744, %v242_v24  }
  0x3c   : > { %317 = vperm.xlu1 %745, %v245_v25   ;;  %312 = vperm.xlu0 %744, %v244_v26  }
  0x3e   : > { %686 = vmatmul.mubr.msk.bf16.gmra.mxu0 %vm395_vm0, %v755_v21  ;;  %691 = vmatmul.mubr.msk.bf16.gmra.mxu1 %vm395_vm0, %v756_v22 }
  0x3f   : > { %495 = vmatprep.mubr.bf16.mxu0 %v820_v2 }
  0x40   : > { %327 = vperm.xlu1 %745, %v247_v28   ;;  %322 = vperm.xlu0 %744, %v246_v29  }
  0x44   : > { %337 = vperm.xlu1 %745, %v249_v30   ;;  %332 = vperm.xlu0 %744, %v248_v31  }
  0x46   : > { %687 = vmatmul.mubr.msk.bf16.gmra.mxu0 %vm395_vm0, %v757_v27 }
  0x9f   : > { %v253_v32 = vpop.permute.xlu0 %252  ;;  %v263_v33 = vpop.permute.xlu1 %262 }
  0xa3   : > { %v258_v34 = vpop.permute.xlu0 %257  ;;  %v268_v35 = vpop.permute.xlu1 %267 }
  0xa7   : > { %v995_v36 = vpop.permute.xlu0 %272  ;;  %v997_v37 = vpop.permute.xlu1 %277 }
  0xab   : > { %v999_v38 = vpop.permute.xlu0 %282  ;;  %v1001_v39 = vpop.permute.xlu1 %287 }
  0xaf   : > { %v1003_v40 = vpop.permute.xlu0 %292  ;;  %v1006_v41 = vpop.permute.xlu1 %297 }
  0xb3   : > { %v303_v42 = vpop.permute.xlu0 %302  ;;  %v308_v49 = vpop.permute.xlu1 %307 }
  0xb7   : > { %v313_v58 = vpop.permute.xlu0 %312  ;;  %v318_v3 = vpop.permute.xlu1 %317 }
  0xbb   : > { %v323_v12 = vpop.permute.xlu0 %322  ;;  %v328_v21 = vpop.permute.xlu1 %327 }
  0xbf   : > { %v333_v30 = vpop.permute.xlu0 %332 }
  0xe6   : > { %v457_v43 = vpop.f32.mrf.mxu0  ;;  %v507_v44 = vpop.f32.mrf.mxu1 }
  0xe7   : > { %v458_v45 = vadd.f32 %v457_v43, %v253_v32  ;;  %v508_v46 = vadd.f32 %v507_v44, %v303_v42  ;;  %v338_v44 = vpop.permute.xlu1 %337 }
  0xe8   : > { %v459_v47 = vpop.f32.mrf.mxu0  ;;  %v509_v48 = vpop.f32.mrf.mxu1 }
  0xe9   : > { %546 = vst [vmem:[%s1008_s11] sm:$0xff] %v458_v45  ;;  %566 = vst [vmem:[%s1008_s11 + $0xa0] sm:$0xff] %v508_v46  ;;  %v460_v50 = vadd.f32 %v459_v47, %v253_v32  ;;  %v510_v51 = vadd.f32 %v509_v48, %v303_v42 }
  0xea   : > { %v461_v52 = vpop.f32.mrf.mxu0  ;;  %v511_v53 = vpop.f32.mrf.mxu1 }
  0xeb   : > { %547 = vst [vmem:[%s1008_s11 + $0x8] sm:$0xff] %v460_v50  ;;  %567 = vst [vmem:[%s1008_s11 + $0xa8] sm:$0xff] %v510_v51  ;;  %v462_v54 = vadd.f32 %v461_v52, %v258_v34  ;;  %v512_v55 = vadd.f32 %v511_v53, %v308_v49 }
  0xec   : > { %v463_v56 = vpop.f32.mrf.mxu0  ;;  %v513_v57 = vpop.f32.mrf.mxu1 }
  0xed   : > { %548 = vst [vmem:[%s1008_s11 + $0x10] sm:$0xff] %v462_v54  ;;  %568 = vst [vmem:[%s1008_s11 + $0xb0] sm:$0xff] %v512_v55  ;;  %v464_v59 = vadd.f32 %v463_v56, %v258_v34  ;;  %v514_v60 = vadd.f32 %v513_v57, %v308_v49 }
  0xee   : > { %v467_v61 = vpop.f32.mrf.mxu0  ;;  %v517_v62 = vpop.f32.mrf.mxu1 }
  0xef   : > { %549 = vst [vmem:[%s1008_s11 + $0x18] sm:$0xff] %v464_v59  ;;  %569 = vst [vmem:[%s1008_s11 + $0xb8] sm:$0xff] %v514_v60  ;;  %v468_v63 = vadd.f32 %v467_v61, %v263_v33  ;;  %v518_v0 = vadd.f32 %v517_v62, %v313_v58 }
  0xf0   : > { %v469_v1 = vpop.f32.mrf.mxu0  ;;  %v519_v2 = vpop.f32.mrf.mxu1 }
  0xf1   : > { %550 = vst [vmem:[%s1008_s11 + $0x20] sm:$0xff] %v468_v63  ;;  %570 = vst [vmem:[%s1008_s11 + $0xc0] sm:$0xff] %v518_v0  ;;  %v470_v4 = vadd.f32 %v469_v1, %v263_v33  ;;  %v520_v5 = vadd.f32 %v519_v2, %v313_v58 }
  0xf2   : > { %v471_v6 = vpop.f32.mrf.mxu0  ;;  %v521_v7 = vpop.f32.mrf.mxu1 }
  0xf3   : > { %551 = vst [vmem:[%s1008_s11 + $0x28] sm:$0xff] %v470_v4  ;;  %571 = vst [vmem:[%s1008_s11 + $0xc8] sm:$0xff] %v520_v5  ;;  %v472_v8 = vadd.f32 %v471_v6, %v268_v35  ;;  %v522_v9 = vadd.f32 %v521_v7, %v318_v3 }
  0xf4   : > { %v473_v10 = vpop.f32.mrf.mxu0  ;;  %v523_v11 = vpop.f32.mrf.mxu1 }
  0xf5   : > { %552 = vst [vmem:[%s1008_s11 + $0x30] sm:$0xff] %v472_v8  ;;  %572 = vst [vmem:[%s1008_s11 + $0xd0] sm:$0xff] %v522_v9  ;;  %v474_v13 = vadd.f32 %v473_v10, %v268_v35  ;;  %v524_v14 = vadd.f32 %v523_v11, %v318_v3 }
  0xf6   : > { %v477_v15 = vpop.f32.mrf.mxu0  ;;  %v527_v16 = vpop.f32.mrf.mxu1 }
  0xf7   : > { %553 = vst [vmem:[%s1008_s11 + $0x38] sm:$0xff] %v474_v13  ;;  %573 = vst [vmem:[%s1008_s11 + $0xd8] sm:$0xff] %v524_v14  ;;  %v478_v17 = vadd.f32 %v477_v15, %v995_v36  ;;  %v528_v18 = vadd.f32 %v527_v16, %v323_v12 }
  0xf8   : > { %v479_v19 = vpop.f32.mrf.mxu0  ;;  %v529_v20 = vpop.f32.mrf.mxu1 }
  0xf9   : > { %554 = vst [vmem:[%s1008_s11 + $0x40] sm:$0xff] %v478_v17  ;;  %574 = vst [vmem:[%s1008_s11 + $0xe0] sm:$0xff] %v528_v18  ;;  %v480_v22 = vadd.f32 %v479_v19, %v995_v36  ;;  %v530_v23 = vadd.f32 %v529_v20, %v323_v12 }
  0xfa   : > { %v481_v24 = vpop.f32.mrf.mxu0  ;;  %v531_v25 = vpop.f32.mrf.mxu1 }
  0xfb   : > { %555 = vst [vmem:[%s1008_s11 + $0x48] sm:$0xff] %v480_v22  ;;  %575 = vst [vmem:[%s1008_s11 + $0xe8] sm:$0xff] %v530_v23  ;;  %v482_v26 = vadd.f32 %v481_v24, %v997_v37  ;;  %v532_v27 = vadd.f32 %v531_v25, %v328_v21 }
  0xfc   : > { %v483_v28 = vpop.f32.mrf.mxu0  ;;  %v533_v29 = vpop.f32.mrf.mxu1 }
  0xfd   : > { %556 = vst [vmem:[%s1008_s11 + $0x50] sm:$0xff] %v482_v26  ;;  %576 = vst [vmem:[%s1008_s11 + $0xf0] sm:$0xff] %v532_v27  ;;  %v484_v31 = vadd.f32 %v483_v28, %v997_v37  ;;  %v534_v32 = vadd.f32 %v533_v29, %v328_v21 }
  0xfe   : > { %v487_v33 = vpop.f32.mrf.mxu0  ;;  %v537_v34 = vpop.f32.mrf.mxu1 }
  0xff   : > { %557 = vst [vmem:[%s1008_s11 + $0x58] sm:$0xff] %v484_v31  ;;  %577 = vst [vmem:[%s1008_s11 + $0xf8] sm:$0xff] %v534_v32  ;;  %v488_v35 = vadd.f32 %v487_v33, %v999_v38  ;;  %v538_v36 = vadd.f32 %v537_v34, %v333_v30 }
 0x100   : > { %v489_v42 = vpop.f32.mrf.mxu0  ;;  %v539_v43 = vpop.f32.mrf.mxu1 }
 0x101   : > { %558 = vst [vmem:[%s1008_s11 + $0x60] sm:$0xff] %v488_v35  ;;  %578 = vst [vmem:[%s1008_s11 + $0x100] sm:$0xff] %v538_v36  ;;  %v490_v37 = vadd.f32 %v489_v42, %v999_v38  ;;  %v540_v45 = vadd.f32 %v539_v43, %v333_v30 }
 0x102   : > { %v491_v46 = vpop.f32.mrf.mxu0  ;;  %v541_v47 = vpop.f32.mrf.mxu1 }
 0x103   : > { %559 = vst [vmem:[%s1008_s11 + $0x68] sm:$0xff] %v490_v37  ;;  %579 = vst [vmem:[%s1008_s11 + $0x108] sm:$0xff] %v540_v45  ;;  %v492_v48 = vadd.f32 %v491_v46, %v1001_v39  ;;  %v542_v49 = vadd.f32 %v541_v47, %v338_v44 }
 0x104   : > { %v493_v50 = vpop.f32.mrf.mxu0  ;;  %v543_v51 = vpop.f32.mrf.mxu1 }
 0x105   : > { %560 = vst [vmem:[%s1008_s11 + $0x70] sm:$0xff] %v492_v48  ;;  %580 = vst [vmem:[%s1008_s11 + $0x110] sm:$0xff] %v542_v49  ;;  %v494_v52 = vadd.f32 %v493_v50, %v1001_v39  ;;  %v544_v38 = vadd.f32 %v543_v51, %v338_v44 }
 0x106   : > { %v497_v53 = vpop.f32.mrf.mxu0 }
 0x107   : > { %561 = vst [vmem:[%s1008_s11 + $0x78] sm:$0xff] %v494_v52  ;;  %581 = vst [vmem:[%s1008_s11 + $0x118] sm:$0xff] %v544_v38  ;;  %v498_v54 = vadd.f32 %v497_v53, %v1003_v40 }
 0x108   : > { %v499_v55 = vpop.f32.mrf.mxu0 }
 0x109   : > { %562 = vst [vmem:[%s1008_s11 + $0x80] sm:$0xff] %v498_v54  ;;  %v500_v56 = vadd.f32 %v499_v55, %v1003_v40 }
 0x10a   : > { %v501_v57 = vpop.f32.mrf.mxu0 }
 0x10b   : > { %563 = vst [vmem:[%s1008_s11 + $0x88] sm:$0xff] %v500_v56  ;;  %v502_v39 = vadd.f32 %v501_v57, %v1006_v41 }
 0x10c   : > { %v503_v58 = vpop.f32.mrf.mxu0 }
 0x10d   : > { %564 = vst [vmem:[%s1008_s11 + $0x90] sm:$0xff] %v502_v39  ;;  %v504_v59 = vadd.f32 %v503_v58, %v1006_v41 }
 0x10f   : > { %565 = vst [vmem:[%s1008_s11 + $0x98] sm:$0xff] %v504_v59 }
 0x110   : > { %771 = shalt.err (!%p768_p5)
}
 0x111   : > { %s772_s30 = scalar_lea.hbm %s1061_s25, 4608  ;;  %s776_s7 = scalar_lea.hbm %s1112_s3, 9216 }
 0x112   : > { %p773_p7 = scmp.ne.s32.totalorder %s1061_s25, %s772_s30  ;;  %p777_p12 = scmp.lt.s32.totalorder %s1061_s25, %s1112_s3 }
 0x113   : > { %p778_p13 = scmp.lt.s32.totalorder %s776_s7, %s772_s30 }
 0x114   : > { %p774_p10 = pnand %p773_p7, %p883_p6 }
 0x115   : > { %p779_p0 = por %p778_p13, %p777_p12 }
 0x116   : > { %p775_p11 = pneg %p774_p10 }
 0x118   : > { %p780_p1 = pnand %p779_p0, %p775_p11 }
 0x11a   : > { %783 = shalt.err (!%p780_p1)
}
 0x11b   : > { %s822_s10 = smov 256   ;;  %s823_s11 = smov 512  }
 0x11c   : > { %s824_s17 = smov 16  }
 0x11d   : > { %701 = dma.vmem_to_hbm [thread:$0]  (%p883_p6), %s1063_s19, 4608, %s1061_s25, %s583_s16, %s822_s10, %s823_s11, %s824_s17  }
 0x11e PF: > { %s611_s20 = sand.u32 1, %s806_s12   ;;  %p704_p2 = pnand %p666_p9, %p887_p8 }
 0x11f   : > { %s612_s24 = scalar_lea.sflag [#allocation4], %s611_s20 }
 0x120   : > { %p705_p3 = pneg %p704_p2 }
 0x122   : > { %801 = dma.done.wait (%p705_p3), %s612_s24, 4608  }
 0x123   : > { %803 = vsyncadd (%p705_p3), %s612_s24, 4294962688  ;;  %p13_p4 = scmp.ge.s32.totalorder %s868_s18, 4   ;;  %s1115_s12 = smov %s810_s13 }
 0x124   : > { %s1116_s13 = smov %s814_s14  ;;  %s1117_s14 = smov %s881_s21 }
 0x125   : > { %s1118_s15 = smov %s868_s18  ;;  %15 = sbr.rel (!%p13_p4) target bundleno = 3 (0x3), region = 110 }
 0x12a   :  { %617 = vsyncpa [#allocation4], 1 }
 0x12b   :  { %619 = vsyncpa [#allocation4 + $0x1], 1 }

</bundles_post_ra>
